<compile_context>
chip_gen: v5e
topology: v5e:2x2
jax: 0.10.0
libtpu: 0.0.40
codegen_flags: <defaults>
</compile_context>

<pallas_src>
import functools

import jax
import jax.numpy as jnp
from jax import lax
from jax.experimental import pallas as pl
from jax.experimental.pallas import tpu as pltpu


def _mlp_kernel(x_ref, w1_ref, b1_ref, w2_ref, b2_ref, w3_ref, b3_ref, o_ref,
                *, num_sub, sub_rows):
    """One batch tile of the fused 3-layer MLP, processed in sub_rows-row sub-tiles."""

    # Hoist bias loads out of the (unrolled) loop; JAX does not CSE these.
    b1 = b1_ref[...]          # (1, 128) f32
    b2 = b2_ref[...]          # (1, 32)  f32
    b3 = b3_ref[...]          # (1, OUTP) f32

    def body(s, carry):
        r = pl.multiple_of(s * sub_rows, sub_rows)
        # x is streamed in its native f32 layout; cast to bf16 for the MXU here.
        xs = x_ref[pl.ds(r, sub_rows), :].astype(jnp.bfloat16)   # (sub, nfeat)

        # fc1 + relu (MXU bf16 in, f32 accumulate; bias/relu on VPU in f32)
        h1 = jnp.dot(xs, w1_ref[...], preferred_element_type=jnp.float32)
        h1 = jnp.maximum(h1 + b1, 0.0)

        # fc2 + relu
        h2 = jnp.dot(h1.astype(jnp.bfloat16), w2_ref[...],
                     preferred_element_type=jnp.float32)
        h2 = jnp.maximum(h2 + b2, 0.0)

        # fc3 (no activation); lane-dense (padded) bf16 output store
        y = jnp.dot(h2.astype(jnp.bfloat16), w3_ref[...],
                    preferred_element_type=jnp.float32) + b3
        o_ref[pl.ds(r, sub_rows), :] = y.astype(o_ref.dtype)
        return carry

    lax.fori_loop(0, num_sub, body, 0, unroll=True)


def _round_up(v, m):
    return (v + m - 1) // m * m


@jax.jit
def vert_nn_forward(x, w1, b1, w2, b2, w3, b3):
    """x: (N, nfeat) f32; w*: (in, out); b*: (1, out). Returns (N, fc_out) in x.dtype."""
    N, nfeat = x.shape
    h1 = w1.shape[1]
    h2 = w2.shape[1]
    fc_out = w3.shape[1]
    out_dtype = x.dtype

    # ---- adaptive batch tiling (shapes are static under jit) -------------------
    sub_rows = min(128, _round_up(max(N, 1), 16))       # 16-row granularity (bf16 out tile)
    tm = min(512, _round_up(N, sub_rows))
    tm = _round_up(tm, sub_rows)                         # tm is a multiple of sub_rows
    NP = _round_up(N, tm)
    num_sub = tm // sub_rows

    # Lane-dense padded output width (sliced back in the wrapper).
    OUTP = max(_round_up(fc_out, 128), 128)

    # Batch pad only if needed (never for the demo shape). x stays f32 — no
    # materialized bf16 copy of the activations.
    xp = x if NP == N else jnp.pad(x, ((0, NP - N), (0, 0)))

    # Weights are tiny: cast to bf16 once in the wrapper; biases stay f32.
    w1b = w1.astype(jnp.bfloat16)
    w2b = w2.astype(jnp.bfloat16)
    w3p = jnp.zeros((h2, OUTP), jnp.bfloat16).at[:, :fc_out].set(w3.astype(jnp.bfloat16))
    b1f = b1.astype(jnp.float32)
    b2f = b2.astype(jnp.float32)
    b3p = jnp.zeros((1, OUTP), jnp.float32).at[:, :fc_out].set(b3.astype(jnp.float32))

    grid = (NP // tm,)

    flops = 2 * NP * (nfeat * h1 + h1 * h2 + h2 * OUTP)
    bytes_accessed = (xp.size * 4 + w1b.size * 2 + w2b.size * 2 + w3p.size * 2
                      + (b1f.size + b2f.size + b3p.size) * 4 + NP * OUTP * 2)

    kernel = functools.partial(_mlp_kernel, num_sub=num_sub, sub_rows=sub_rows)

    out_padded = pl.pallas_call(
        kernel,
        out_shape=jax.ShapeDtypeStruct((NP, OUTP), jnp.bfloat16),
        grid_spec=pl.GridSpec(
            grid=grid,
            in_specs=[
                pl.BlockSpec((tm, nfeat), lambda i: (i, 0)),    # x tile (streamed, f32)
                pl.BlockSpec((nfeat, h1), lambda i: (0, 0)),    # w1 (resident)
                pl.BlockSpec((1, h1), lambda i: (0, 0)),        # b1
                pl.BlockSpec((h1, h2), lambda i: (0, 0)),       # w2
                pl.BlockSpec((1, h2), lambda i: (0, 0)),        # b2
                pl.BlockSpec((h2, OUTP), lambda i: (0, 0)),     # w3 (lane-padded)
                pl.BlockSpec((1, OUTP), lambda i: (0, 0)),      # b3 (lane-padded)
            ],
            out_specs=pl.BlockSpec((tm, OUTP), lambda i: (i, 0)),
        ),
        compiler_params=pltpu.CompilerParams(
            dimension_semantics=("parallel",),   # batch grid; shards across TCs on v7x
            vmem_limit_bytes=16 * 1024 * 1024,   # per-step footprint < 1 MiB; ample headroom
        ),
        cost_estimate=pl.CostEstimate(
            flops=flops, transcendentals=0, bytes_accessed=bytes_accessed),
    )(xp, w1b, b1f, w2b, b2f, w3p, b3p)

    return out_padded[:N, :fc_out].astype(out_dtype)


def _init_linear(key, fan_in, fan_out, dtype=jnp.float32):
    """PyTorch nn.Linear default init: U(-1/sqrt(fan_in), 1/sqrt(fan_in)).
    Weight stored as (fan_in, fan_out) (transposed vs. torch); bias (1, fan_out)."""
    kw, kb = jax.random.split(key)
    bound = 1.0 / jnp.sqrt(jnp.asarray(fan_in, dtype))
    w = jax.random.uniform(kw, (fan_in, fan_out), dtype, -bound, bound)
    b = jax.random.uniform(kb, (1, fan_out), dtype, -bound, bound)
    return w, b


def _reference_forward(x, w1, b1, w2, b2, w3, b3):
    y = jnp.maximum(x @ w1 + b1, 0.0)
    y = jnp.maximum(y @ w2 + b2, 0.0)
    return y @ w3 + b3


if __name__ == "__main__":
    # Small shapes consistent with the module: batch=8, nfeat=64, hidden (128, 32),
    # fc_out=16. Adaptive tiling keeps the padded batch at 16 rows for this shape.
    N, NFEAT, FC_OUT = 8, 64, 16

    key = jax.random.PRNGKey(0)
    kx, k1, k2, k3 = jax.random.split(key, 4)

    x = jax.random.normal(kx, (N, NFEAT), jnp.float32)
    w1, b1 = _init_linear(k1, NFEAT, 128)
    w2, b2 = _init_linear(k2, 128, 32)
    w3, b3 = _init_linear(k3, 32, FC_OUT)

    out = vert_nn_forward(x, w1, b1, w2, b2, w3, b3)
    out = jax.block_until_ready(out)

    ref = _reference_forward(x, w1, b1, w2, b2, w3, b3)
    assert out.shape == (N, FC_OUT)
    # Tolerance loosened vs the pure-f32 reference: bf16 MXU operands + bf16 output.
    assert jnp.allclose(out, ref, atol=5e-2, rtol=5e-2), "mismatch vs reference"

    print("KERNEL_OK")
</pallas_src>

<mosaic_0001>
module attributes {stable_mosaic.version = 11 : i64} {
  func.func @_mlp_kernel(%arg0: i32, %arg1: memref<16x64xf32, #tpu.memory_space<vmem>>, %arg2: memref<64x128xbf16, #tpu.memory_space<vmem>>, %arg3: memref<1x128xf32, #tpu.memory_space<vmem>>, %arg4: memref<128x32xbf16, #tpu.memory_space<vmem>>, %arg5: memref<1x32xf32, #tpu.memory_space<vmem>>, %arg6: memref<32x128xbf16, #tpu.memory_space<vmem>>, %arg7: memref<1x128xf32, #tpu.memory_space<vmem>>, %arg8: memref<16x128xbf16, #tpu.memory_space<vmem>>) attributes {dimension_semantics = [#tpu.dimension_semantics<parallel>], iteration_bounds = array<i64: 1>, scalar_prefetch = 0 : i64, scratch_operands = 0 : i64, tpu.core_type = #tpu.core_type<tc>, window_params = [{transform_indices = @transform_0, window_bounds = array<i64: 16, 64>}, {pipeline_mode = #tpu.pipeline_mode<synchronous>, transform_indices = @transform_1, window_bounds = array<i64: 64, 128>}, {pipeline_mode = #tpu.pipeline_mode<synchronous>, transform_indices = @transform_2, window_bounds = array<i64: 1, 128>}, {pipeline_mode = #tpu.pipeline_mode<synchronous>, transform_indices = @transform_3, window_bounds = array<i64: 128, 32>}, {pipeline_mode = #tpu.pipeline_mode<synchronous>, transform_indices = @transform_4, window_bounds = array<i64: 1, 32>}, {pipeline_mode = #tpu.pipeline_mode<synchronous>, transform_indices = @transform_5, window_bounds = array<i64: 32, 128>}, {pipeline_mode = #tpu.pipeline_mode<synchronous>, transform_indices = @transform_6, window_bounds = array<i64: 1, 128>}, {transform_indices = @transform_7, window_bounds = array<i64: 16, 128>}]} {
    %c0 = arith.constant 0 : index
    %c0_0 = arith.constant 0 : index
    %0 = vector.load %arg3[%c0, %c0_0] : memref<1x128xf32, #tpu.memory_space<vmem>>, vector<1x128xf32>
    %c0_1 = arith.constant 0 : index
    %c0_2 = arith.constant 0 : index
    %1 = vector.load %arg5[%c0_1, %c0_2] : memref<1x32xf32, #tpu.memory_space<vmem>>, vector<1x32xf32>
    %c0_3 = arith.constant 0 : index
    %c0_4 = arith.constant 0 : index
    %2 = vector.load %arg7[%c0_3, %c0_4] : memref<1x128xf32, #tpu.memory_space<vmem>>, vector<1x128xf32>
    %c0_i32 = arith.constant 0 : i32
    %c16_i32 = arith.constant 16 : i32
    %3 = arith.muli %c0_i32, %c16_i32 : i32
    %4 = tpu.assume_multiple %3, 16 : i32
    %5 = arith.index_cast %4 : i32 to index
    %c0_5 = arith.constant 0 : index
    %6 = vector.load %arg1[%5, %c0_5] : memref<16x64xf32, #tpu.memory_space<vmem>>, vector<16x64xf32>
    %7 = arith.truncf %6 : vector<16x64xf32> to vector<16x64xbf16>
    %c0_6 = arith.constant 0 : index
    %c0_7 = arith.constant 0 : index
    %8 = vector.load %arg2[%c0_6, %c0_7] : memref<64x128xbf16, #tpu.memory_space<vmem>>, vector<64x128xbf16>
    %cst = arith.constant dense<0.000000e+00> : vector<16x128xf32>
    %9 = tpu.matmul %7, %8, %cst {dimension_numbers = #tpu.dot_dimension_numbers<[1], [0], [0], [1], [0, 0, 1, 1], [], []>} : vector<16x64xbf16>, vector<64x128xbf16>, vector<16x128xf32> -> vector<16x128xf32>
    %10 = vector.broadcast %0 : vector<1x128xf32> to vector<16x128xf32>
    %11 = arith.addf %9, %10 : vector<16x128xf32>
    %cst_8 = arith.constant 0.000000e+00 : f32
    %12 = vector.broadcast %cst_8 : f32 to vector<16x128xf32>
    %13 = arith.maximumf %11, %12 : vector<16x128xf32>
    %14 = arith.truncf %13 : vector<16x128xf32> to vector<16x128xbf16>
    %c0_9 = arith.constant 0 : index
    %c0_10 = arith.constant 0 : index
    %15 = vector.load %arg4[%c0_9, %c0_10] : memref<128x32xbf16, #tpu.memory_space<vmem>>, vector<128x32xbf16>
    %cst_11 = arith.constant dense<0.000000e+00> : vector<16x32xf32>
    %16 = tpu.matmul %14, %15, %cst_11 {dimension_numbers = #tpu.dot_dimension_numbers<[1], [0], [0], [1], [0, 0, 1, 1], [], []>} : vector<16x128xbf16>, vector<128x32xbf16>, vector<16x32xf32> -> vector<16x32xf32>
    %17 = vector.broadcast %1 : vector<1x32xf32> to vector<16x32xf32>
    %18 = arith.addf %16, %17 : vector<16x32xf32>
    %cst_12 = arith.constant 0.000000e+00 : f32
    %19 = vector.broadcast %cst_12 : f32 to vector<16x32xf32>
    %20 = arith.maximumf %18, %19 : vector<16x32xf32>
    %21 = arith.truncf %20 : vector<16x32xf32> to vector<16x32xbf16>
    %c0_13 = arith.constant 0 : index
    %c0_14 = arith.constant 0 : index
    %22 = vector.load %arg6[%c0_13, %c0_14] : memref<32x128xbf16, #tpu.memory_space<vmem>>, vector<32x128xbf16>
    %cst_15 = arith.constant dense<0.000000e+00> : vector<16x128xf32>
    %23 = tpu.matmul %21, %22, %cst_15 {dimension_numbers = #tpu.dot_dimension_numbers<[1], [0], [0], [1], [0, 0, 1, 1], [], []>} : vector<16x32xbf16>, vector<32x128xbf16>, vector<16x128xf32> -> vector<16x128xf32>
    %24 = vector.broadcast %2 : vector<1x128xf32> to vector<16x128xf32>
    %25 = arith.addf %23, %24 : vector<16x128xf32>
    %26 = arith.truncf %25 : vector<16x128xf32> to vector<16x128xbf16>
    %27 = arith.index_cast %4 : i32 to index
    %c0_16 = arith.constant 0 : index
    %28 = vector.load %arg8[%27, %c0_16] : memref<16x128xbf16, #tpu.memory_space<vmem>>, vector<16x128xbf16>
    tpu.vector_store %arg8[%27, %c0_16], %26 {strides = array<i32>} : memref<16x128xbf16, #tpu.memory_space<vmem>>, vector<16x128xbf16>,
    %c1_i32 = arith.constant 1 : i32
    return
  }
  func.func @transform_0(%arg0: i32) -> (i32, i32) {
    %c0_i32 = arith.constant 0 : i32
    %c0_i32_0 = arith.constant 0 : i32
    return %arg0, %c0_i32 : i32, i32
  }
  func.func @transform_1(%arg0: i32) -> (i32, i32) {
    %c0_i32 = arith.constant 0 : i32
    %c0_i32_0 = arith.constant 0 : i32
    %c0_i32_1 = arith.constant 0 : i32
    return %c0_i32, %c0_i32_0 : i32, i32
  }
  func.func @transform_2(%arg0: i32) -> (i32, i32) {
    %c0_i32 = arith.constant 0 : i32
    %c0_i32_0 = arith.constant 0 : i32
    %c0_i32_1 = arith.constant 0 : i32
    return %c0_i32, %c0_i32_0 : i32, i32
  }
  func.func @transform_3(%arg0: i32) -> (i32, i32) {
    %c0_i32 = arith.constant 0 : i32
    %c0_i32_0 = arith.constant 0 : i32
    %c0_i32_1 = arith.constant 0 : i32
    return %c0_i32, %c0_i32_0 : i32, i32
  }
  func.func @transform_4(%arg0: i32) -> (i32, i32) {
    %c0_i32 = arith.constant 0 : i32
    %c0_i32_0 = arith.constant 0 : i32
    %c0_i32_1 = arith.constant 0 : i32
    return %c0_i32, %c0_i32_0 : i32, i32
  }
  func.func @transform_5(%arg0: i32) -> (i32, i32) {
    %c0_i32 = arith.constant 0 : i32
    %c0_i32_0 = arith.constant 0 : i32
    %c0_i32_1 = arith.constant 0 : i32
    return %c0_i32, %c0_i32_0 : i32, i32
  }
  func.func @transform_6(%arg0: i32) -> (i32, i32) {
    %c0_i32 = arith.constant 0 : i32
    %c0_i32_0 = arith.constant 0 : i32
    %c0_i32_1 = arith.constant 0 : i32
    return %c0_i32, %c0_i32_0 : i32, i32
  }
  func.func @transform_7(%arg0: i32) -> (i32, i32) {
    %c0_i32 = arith.constant 0 : i32
    %c0_i32_0 = arith.constant 0 : i32
    return %arg0, %c0_i32 : i32, i32
  }
}

</mosaic_0001>

<bundles_post_ra>
// kernel: vert_nn_forward.1
= control target key start
LH: loop header
LB: loop body
LE: loop exit
PB: predicated region body
PF: predicated region fallthrough
CT: control target
= control target key end

     0   :  { %vm68_vm0 = vcmask 523264   ;;  %vm192_vm1 = vcmask 261120   ;;  %s398_s1 = inlined_call_operand.vmem [shape: bf16[64,128], index: 1, kind: input, shape index: {}]   ;;  %s399_s3 = inlined_call_operand.vmem [shape: bf16[128,32], index: 3, kind: input, shape index: {}]   ;;  %s400_s2 = inlined_call_operand.vmem [shape: f32[1,128], index: 2, kind: input, shape index: {}]   ;;  %s401_s0 = inlined_call_operand.vmem [shape: f32[16,64], index: 0, kind: input, shape index: {}]   ;;  %s402_s4 = inlined_call_operand.vmem [shape: f32[1,32], index: 4, kind: input, shape index: {}]   ;;  %s403_s6 = inlined_call_operand.vmem [shape: f32[1,128], index: 6, kind: input, shape index: {}]   ;;  %s404_s5 = inlined_call_operand.vmem [shape: bf16[32,128], index: 5, kind: input, shape index: {}]   ;;  %s405_s7 = inlined_call_operand.vmem [shape: bf16[16,128], index: 7, kind: output, shape index: {}]  }
   0x1   :  { %v279_v0 = vld [vmem:[%s398_s1 + $0x18] sm:$0xff]  ;;  %v278_v1 = vld [vmem:[%s398_s1 + $0x10] sm:$0xff]  ;;  %v277_v4 = vld [vmem:[%s398_s1 + $0x8] sm:$0xff] }
   0x2   :  { %76 = vmatpush.bf16.msra.mxu0 %v279_v0  ;;  %v287_v2 = vld [vmem:[%s399_s3 + $0x38] sm:$0xff]  ;;  %v286_v3 = vld [vmem:[%s399_s3 + $0x30] sm:$0xff]  ;;  %v285_v5 = vld [vmem:[%s399_s3 + $0x28] sm:$0xff] }
   0x3   :  { %156 = vmatpush.bf16.msra.mxu1 %v287_v2  ;;  %v276_v6 = vld [vmem:[%s398_s1] sm:$0xff]  ;;  %v31_v8 = vld [vmem:[%s401_s0 + $0x8] sm:$0xff]  ;;  %v283_v11 = vld [vmem:[%s399_s3 + $0x18] sm:$0xff] }
   0x4   :  { %v30_v7 = vld [vmem:[%s401_s0] sm:$0xff]  ;;  %v282_v12 = vld [vmem:[%s399_s3 + $0x10] sm:$0xff]  ;;  %v281_v13 = vld [vmem:[%s399_s3 + $0x8] sm:$0xff] }
   0x5   :  { %v284_v9 = vld [vmem:[%s399_s3 + $0x20] sm:$0xff]  ;;  %v32_v10 = vpack.c.bf16 %v31_v8, %v30_v7  ;;  %v289_v23 = vld [vmem:[%s404_s5 + $0x8] sm:$0xff] }
   0x6   :  { %77 = vmatpush.bf16.msra.mxu0 %v278_v1  ;;  %v280_v14 = vld [vmem:[%s399_s3] sm:$0xff]  ;;  %202 = vmatpush.bf16.msra.mxu2 %v289_v23 }
   0x7   :  { %157 = vmatpush.bf16.msra.mxu1 %v286_v3  ;;  %v295_v16 = vld [vmem:[%s400_s2] ss:$0 sm:$0xff] }
   0x8   :  { %v288_v24 = vld [vmem:[%s404_s5] sm:$0xff] }
   0x9   :  { %v296_v26 = vld [vmem:[%s402_s4] ss:$0 sm:$0xff] }
   0xa   :  { %78 = vmatpush.bf16.msra.mxu0 %v277_v4  ;;  %203 = vmatpush.bf16.msra.mxu2 %v288_v24  ;;  %v297_v34 = vld [vmem:[%s403_s6] ss:$0 sm:$0xff] }
   0xb   :  { %158 = vmatpush.bf16.msra.mxu1 %v285_v5 }
   0xe   :  { %79 = vmatpush.bf16.msra.mxu0 %v276_v6 }
   0xf   :  { %159 = vmatpush.bf16.msra.mxu1 %v284_v9 }
  0x11   :  { %234 = vmatmul.msk.bf16.vlgmr.msra.gmra.mxu0 %vm68_vm0, %v32_v10 }
  0x13   :  { %160 = vmatpush.bf16.msra.mxu1 %v283_v11 }
  0x17   :  { %161 = vmatpush.bf16.msra.mxu1 %v282_v12 }
  0x1b   :  { %162 = vmatpush.bf16.msra.mxu1 %v281_v13 }
  0x1f   :  { %163 = vmatpush.bf16.msra.mxu1 %v280_v14 }
  0x8e   :  { %v81_v15 = vpop.f32.mrf.mxu0 }
  0x8f   :  { %v82_v17 = vadd.f32 %v295_v16, %v81_v15 }
  0x91   :  { %v86_v20 = vmax.f32 %v82_v17, 0.0 }
  0x96   :  { %v83_v18 = vpop.f32.mrf.mxu0 }
  0x97   :  { %v84_v19 = vadd.f32 %v295_v16, %v83_v18 }
  0x99   :  { %v87_v21 = vmax.f32 %v84_v19, 0.0 }
  0x9b   :  { %v88_v22 = vpack.c.bf16 %v87_v21, %v86_v20 }
  0x9d   :  { %164 = vmatmul.bf16.vlgmr.msra.gmra.mxu1 %v88_v22 }
 0x11a   :  { %v165_v25 = vpop.f32.mrf.mxu1 }
 0x11b   :  { %v166_v27 = vadd.f32 %v296_v26, %v165_v25 }
 0x11d   :  { %v170_v30 = vmax.f32 %v166_v27, 0.0 }
 0x122   :  { %v167_v28 = vpop.f32.mrf.mxu1 }
 0x123   :  { %v168_v29 = vadd.f32 %v296_v26, %v167_v28 }
 0x125   :  { %v171_v31 = vmax.f32 %v168_v29, 0.0 }
 0x127   :  { %v172_v32 = vpack.c.bf16 %v171_v31, %v170_v30 }
 0x129   :  { %275 = vmatmul.msk.bf16.vlgmr.msra.gmra.mxu2 %vm192_vm1, %v172_v32 }
 0x1ac   :  { %v205_v33 = vpop.f32.mrf.mxu2 }
 0x1ad   :  { %v206_v36 = vadd.f32 %v297_v34, %v205_v33 }
 0x1b4   :  { %v207_v35 = vpop.f32.mrf.mxu2 }
 0x1b5   :  { %v208_v37 = vadd.f32 %v297_v34, %v207_v35 }
 0x1b7   :  { %v293_v38 = vpack.c.bf16 %v208_v37, %v206_v36 }
 0x1b9   :  { %294 = vst [vmem:[%s405_s7] sm:$0xff] %v293_v38  }

</bundles_post_ra>
